<compile_context>
chip_gen: v7x
topology: tpu7x:2x2x1
jax: 0.10.0
libtpu: 0.0.40
codegen_flags: <defaults>
</compile_context>

<pallas_src>
import functools

import jax
import jax.numpy as jnp
from jax.experimental import pallas as pl
from jax.experimental.pallas import tpu as pltpu

NN_WIDTH = 30        # params['nn_width']
NN_NUM_LAYERS = 4    # params['nn_num_layers']


def _round_up(x, m):
    return ((x + m - 1) // m) * m


def _mlp_kernel(w_ref, b_ref, x_ref, o_ref, *, positive: bool, nn_num_layers: int):
    """Fused MLP forward on one lane-dense batch tile.

    w_ref: (L+1, P, P) padded weights, layer i stored as (out, in); layers 0 and L
           keep their single in/out vector in column 0.
    b_ref: (L+1, P, 1) padded biases, b_ref[i] = bias column of layer i
           (output-layer scalar bias at b_ref[L, 0, 0]).
    x_ref: (1, TB) batch tile on lanes.
    o_ref: (1, TB).
    """
    x = x_ref[...]                                   # (1, TB) f32, batch on lanes

    # Layer 0: Linear(1, W) + Tanh.  K=1 -> pure VPU broadcast multiply-add.
    w0 = w_ref[0, :, 0:1]                            # (P, 1) column load only
    h = jnp.tanh(w0 * x + b_ref[0])                  # (P, TB); padded rows stay 0

    # Hidden layers 1..L-1: Linear(W, W) + Tanh on the MXU, (P,P) @ (P,TB).
    # Explicit bf16 operands (single-pass MXU, f32 accumulate); elementwise
    # tanh stays in f32.
    for i in range(1, nn_num_layers):
        wi = w_ref[i].astype(jnp.bfloat16)           # (P, P) tiny per-tile cast
        z = jnp.dot(wi, h.astype(jnp.bfloat16),
                    preferred_element_type=jnp.float32)
        h = jnp.tanh(z + b_ref[i])                   # (P, TB) f32

    # Output layer: Linear(W, 1).  N=1 -> sublane reduce instead of an MXU pass.
    wo = w_ref[nn_num_layers, :, 0:1]                # (P, 1)
    bo = b_ref[nn_num_layers, 0:1, :]                # (1, 1)
    out = jnp.sum(wo * h, axis=0, keepdims=True) + bo  # (1, TB)

    if positive:
        # softplus(x) = max(x, 0) + log1p(exp(-|x|))  -- one exp + one log1p.
        out = jnp.maximum(out, 0.0) + jnp.log1p(jnp.exp(-jnp.abs(out)))

    o_ref[...] = out.astype(o_ref.dtype)


def net1_forward(x, w_slab, b_slab, *, positive: bool = False, block_b: int = 4096,
                 nn_num_layers: int = NN_NUM_LAYERS):
    """x: (B, 1) or (B,) float32.  Returns (B, 1) float32."""
    xr = jnp.asarray(x, jnp.float32).reshape(-1)
    B = xr.shape[0]

    b_pad = _round_up(max(B, 1), 128)
    tb = min(_round_up(block_b, 128), b_pad)         # lane-dense tile, mult of 128
    # v7x has 2 TensorCores: if one tile would cover the whole batch, cap it at
    # half the padded batch so the "parallel" grid has >= 2 blocks to shard.
    if b_pad >= 256:
        tb = min(tb, _round_up(pl.cdiv(b_pad, 2), 128))
    n_blocks = pl.cdiv(b_pad, tb)
    Bp = n_blocks * tb

    x_lane = jnp.pad(xr, (0, Bp - B)).reshape(1, Bp)  # batch on lanes

    L = nn_num_layers
    P = w_slab.shape[1]
    assert w_slab.shape == (L + 1, P, P), "w_slab shape mismatch vs nn_num_layers"
    assert b_slab.shape == (L + 1, P, 1), "b_slab shape mismatch vs nn_num_layers"

    kernel = functools.partial(_mlp_kernel, positive=positive, nn_num_layers=L)

    cp = dict(dimension_semantics=("parallel",))
    if tb >= 32 * 1024:
        # Only needed for extreme tiles; stays below v7x's 64 MiB physical VMEM.
        cp["vmem_limit_bytes"] = 64 * 1024 * 1024

    out = pl.pallas_call(
        kernel,
        out_shape=jax.ShapeDtypeStruct((1, Bp), jnp.float32),
        grid_spec=pltpu.PrefetchScalarGridSpec(
            num_scalar_prefetch=0,
            grid=(n_blocks,),
            in_specs=[
                # Parameter slabs: constant block index -> DMA'd once, VMEM-resident.
                pl.BlockSpec((L + 1, P, P), lambda i: (0, 0, 0)),
                pl.BlockSpec((L + 1, P, 1), lambda i: (0, 0, 0)),
                # Batch tiles stream through the double-buffered pipeline.
                pl.BlockSpec((1, tb), lambda i: (0, i)),
            ],
            out_specs=pl.BlockSpec((1, tb), lambda i: (0, i)),
        ),
        compiler_params=pltpu.CompilerParams(**cp),
    )(w_slab, b_slab, x_lane)

    return out.reshape(Bp)[:B].reshape(B, 1)


def init_net1_params(key, nn_width=NN_WIDTH, nn_num_layers=NN_NUM_LAYERS):
    """Weights as (in, out), biases as (out,).  Layer 0 uses Xavier-normal like
    the PyTorch module; the rest use PyTorch's default Linear init."""
    dims = [1] + [nn_width] * nn_num_layers + [1]
    weights, biases = [], []
    for i, (fan_in, fan_out) in enumerate(zip(dims[:-1], dims[1:])):
        key, wk, bk = jax.random.split(key, 3)
        if i == 0:
            std = (2.0 / (fan_in + fan_out)) ** 0.5  # xavier_normal_
            w = std * jax.random.normal(wk, (fan_in, fan_out), dtype=jnp.float32)
        else:
            bound = 1.0 / (fan_in ** 0.5)
            w = jax.random.uniform(wk, (fan_in, fan_out), dtype=jnp.float32,
                                   minval=-bound, maxval=bound)
        bound_b = 1.0 / (fan_in ** 0.5)
        b = jax.random.uniform(bk, (fan_out,), dtype=jnp.float32,
                               minval=-bound_b, maxval=bound_b)
        weights.append(w)
        biases.append(b)
    return weights, biases


def pack_net1_params(weights, biases, nn_width=NN_WIDTH,
                     nn_num_layers=NN_NUM_LAYERS):
    """Pack into two zero-padded slabs consumed by the kernel.

    w_slab[i] holds layer i's weight in (out, in) orientation (padded to (P, P));
    layer 0's (W,) column and the output layer's (W,) column both sit in column 0.
    b_slab[i] holds layer i's bias as a (P, 1) column (output bias at [L, 0, 0]).
    Slabs are built from zeros and only the valid region is written, so padded
    rows/cols are exactly zero and stay zero through every layer (tanh(0)=0).
    """
    L = nn_num_layers
    assert len(weights) == L + 1 and len(biases) == L + 1
    P = _round_up(nn_width, 8)                 # 30 -> 32 sublanes
    w_slab = jnp.zeros((L + 1, P, P), dtype=jnp.float32)
    b_slab = jnp.zeros((L + 1, P, 1), dtype=jnp.float32)

    # Layer 0: (1, W) -> column of length W.
    w_slab = w_slab.at[0, :nn_width, 0].set(weights[0][0, :])
    b_slab = b_slab.at[0, :nn_width, 0].set(biases[0])
    # Hidden layers: (W, W) stored transposed -> (out, in).
    for i in range(1, L):
        w_slab = w_slab.at[i, :nn_width, :nn_width].set(weights[i].T)
        b_slab = b_slab.at[i, :nn_width, 0].set(biases[i])
    # Output layer: (W, 1) -> column of length W; scalar bias at [L, 0, 0].
    w_slab = w_slab.at[L, :nn_width, 0].set(weights[L][:, 0])
    b_slab = b_slab.at[L, 0, 0].set(biases[L][0])
    return w_slab, b_slab


def net1_reference(x, weights, biases, positive=False):
    h = jnp.asarray(x, jnp.float32)
    n = len(weights)
    for i, (w, b) in enumerate(zip(weights, biases)):
        h = h @ w + b
        if i < n - 1:
            h = jnp.tanh(h)
    if positive:
        h = jax.nn.softplus(h)
    return h


if __name__ == "__main__":
    key = jax.random.PRNGKey(0)
    key, xkey = jax.random.split(key)

    weights, biases = init_net1_params(key)
    w_slab, b_slab = pack_net1_params(weights, biases)

    # Small batch (module trains with batchSize=100): single 128-lane tile.
    B = 8
    x = jax.random.uniform(xkey, (B, 1), dtype=jnp.float32,
                           minval=0.01, maxval=0.99)  # eta-like inputs

    out = jax.block_until_ready(net1_forward(x, w_slab, b_slab, positive=False))
    ref = net1_reference(x, weights, biases, positive=False)
    assert out.shape == (B, 1)
    # Hidden-layer dots use explicit bf16 MXU operands (f32 accumulate), so
    # agreement with the all-f32 reference is at the ~1e-3 level.
    assert jnp.allclose(out, ref, atol=3e-3, rtol=3e-3), "mismatch (positive=False)"

    out_p = jax.block_until_ready(net1_forward(x, w_slab, b_slab, positive=True))
    ref_p = net1_reference(x, weights, biases, positive=True)
    assert jnp.allclose(out_p, ref_p, atol=3e-3, rtol=3e-3), "mismatch (positive=True)"

    # Multi-block path: exercises batch padding and >= 2 grid blocks (the
    # 1-D "parallel" grid that shards across v7x's two TensorCores).
    key, x2key = jax.random.split(key)
    B2 = 300
    x2 = jax.random.uniform(x2key, (B2, 1), dtype=jnp.float32,
                            minval=0.01, maxval=0.99)
    out2 = jax.block_until_ready(net1_forward(x2, w_slab, b_slab, positive=True))
    ref2 = net1_reference(x2, weights, biases, positive=True)
    assert out2.shape == (B2, 1)
    assert jnp.allclose(out2, ref2, atol=3e-3, rtol=3e-3), "mismatch (multi-block)"

    print("KERNEL_OK")
</pallas_src>

<mosaic_0001>
module attributes {stable_mosaic.version = 11 : i64} {
  func.func @_mlp_kernel(%arg0: i32, %arg1: memref<5x32x32xf32, #tpu.memory_space<vmem>>, %arg2: memref<5x32x1xf32, #tpu.memory_space<vmem>>, %arg3: memref<1x128xf32, #tpu.memory_space<vmem>>, %arg4: memref<1x128xf32, #tpu.memory_space<vmem>>) attributes {dimension_semantics = [#tpu.dimension_semantics<parallel>], iteration_bounds = array<i64: 1>, scalar_prefetch = 0 : i64, scratch_operands = 0 : i64, tpu.core_type = #tpu.core_type<tc>, window_params = [{pipeline_mode = #tpu.pipeline_mode<synchronous>, transform_indices = @transform_0, window_bounds = array<i64: 5, 32, 32>}, {pipeline_mode = #tpu.pipeline_mode<synchronous>, transform_indices = @transform_1, window_bounds = array<i64: 5, 32, 1>}, {transform_indices = @transform_2, window_bounds = array<i64: 1, 128>}, {transform_indices = @transform_3, window_bounds = array<i64: 1, 128>}]} {
    %c0 = arith.constant 0 : index
    %c0_0 = arith.constant 0 : index
    %0 = vector.load %arg3[%c0, %c0_0] : memref<1x128xf32, #tpu.memory_space<vmem>>, vector<1x128xf32>
    %c0_1 = arith.constant 0 : index
    %c0_2 = arith.constant 0 : index
    %c0_3 = arith.constant 0 : index
    %1 = vector.load %arg1[%c0_1, %c0_2, %c0_3] : memref<5x32x32xf32, #tpu.memory_space<vmem>>, vector<1x32x1xf32>
    %2 = vector.shape_cast %1 : vector<1x32x1xf32> to vector<32x1xf32>
    %3 = vector.broadcast %2 : vector<32x1xf32> to vector<32x128xf32>
    %4 = vector.broadcast %0 : vector<1x128xf32> to vector<32x128xf32>
    %5 = arith.mulf %3, %4 : vector<32x128xf32>
    %c0_4 = arith.constant 0 : index
    %c0_5 = arith.constant 0 : index
    %c0_6 = arith.constant 0 : index
    %6 = vector.load %arg2[%c0_4, %c0_5, %c0_6] : memref<5x32x1xf32, #tpu.memory_space<vmem>>, vector<1x32x1xf32>
    %7 = vector.shape_cast %6 : vector<1x32x1xf32> to vector<32x1xf32>
    %8 = vector.broadcast %7 : vector<32x1xf32> to vector<32x128xf32>
    %9 = arith.addf %5, %8 : vector<32x128xf32>
    %10 = math.tanh %9 : vector<32x128xf32>
    %c1 = arith.constant 1 : index
    %c0_7 = arith.constant 0 : index
    %c0_8 = arith.constant 0 : index
    %11 = vector.load %arg1[%c1, %c0_7, %c0_8] : memref<5x32x32xf32, #tpu.memory_space<vmem>>, vector<1x32x32xf32>
    %12 = vector.shape_cast %11 : vector<1x32x32xf32> to vector<32x32xf32>
    %13 = arith.truncf %12 : vector<32x32xf32> to vector<32x32xbf16>
    %14 = arith.truncf %10 : vector<32x128xf32> to vector<32x128xbf16>
    %cst = arith.constant dense<0.000000e+00> : vector<32x128xf32>
    %15 = tpu.matmul %13, %14, %cst {dimension_numbers = #tpu.dot_dimension_numbers<[1], [0], [0], [1], [0, 0, 1, 1], [], []>} : vector<32x32xbf16>, vector<32x128xbf16>, vector<32x128xf32> -> vector<32x128xf32>
    %c1_9 = arith.constant 1 : index
    %c0_10 = arith.constant 0 : index
    %c0_11 = arith.constant 0 : index
    %16 = vector.load %arg2[%c1_9, %c0_10, %c0_11] : memref<5x32x1xf32, #tpu.memory_space<vmem>>, vector<1x32x1xf32>
    %17 = vector.shape_cast %16 : vector<1x32x1xf32> to vector<32x1xf32>
    %18 = vector.broadcast %17 : vector<32x1xf32> to vector<32x128xf32>
    %19 = arith.addf %15, %18 : vector<32x128xf32>
    %20 = math.tanh %19 : vector<32x128xf32>
    %c2 = arith.constant 2 : index
    %c0_12 = arith.constant 0 : index
    %c0_13 = arith.constant 0 : index
    %21 = vector.load %arg1[%c2, %c0_12, %c0_13] : memref<5x32x32xf32, #tpu.memory_space<vmem>>, vector<1x32x32xf32>
    %22 = vector.shape_cast %21 : vector<1x32x32xf32> to vector<32x32xf32>
    %23 = arith.truncf %22 : vector<32x32xf32> to vector<32x32xbf16>
    %24 = arith.truncf %20 : vector<32x128xf32> to vector<32x128xbf16>
    %cst_14 = arith.constant dense<0.000000e+00> : vector<32x128xf32>
    %25 = tpu.matmul %23, %24, %cst_14 {dimension_numbers = #tpu.dot_dimension_numbers<[1], [0], [0], [1], [0, 0, 1, 1], [], []>} : vector<32x32xbf16>, vector<32x128xbf16>, vector<32x128xf32> -> vector<32x128xf32>
    %c2_15 = arith.constant 2 : index
    %c0_16 = arith.constant 0 : index
    %c0_17 = arith.constant 0 : index
    %26 = vector.load %arg2[%c2_15, %c0_16, %c0_17] : memref<5x32x1xf32, #tpu.memory_space<vmem>>, vector<1x32x1xf32>
    %27 = vector.shape_cast %26 : vector<1x32x1xf32> to vector<32x1xf32>
    %28 = vector.broadcast %27 : vector<32x1xf32> to vector<32x128xf32>
    %29 = arith.addf %25, %28 : vector<32x128xf32>
    %30 = math.tanh %29 : vector<32x128xf32>
    %c3 = arith.constant 3 : index
    %c0_18 = arith.constant 0 : index
    %c0_19 = arith.constant 0 : index
    %31 = vector.load %arg1[%c3, %c0_18, %c0_19] : memref<5x32x32xf32, #tpu.memory_space<vmem>>, vector<1x32x32xf32>
    %32 = vector.shape_cast %31 : vector<1x32x32xf32> to vector<32x32xf32>
    %33 = arith.truncf %32 : vector<32x32xf32> to vector<32x32xbf16>
    %34 = arith.truncf %30 : vector<32x128xf32> to vector<32x128xbf16>
    %cst_20 = arith.constant dense<0.000000e+00> : vector<32x128xf32>
    %35 = tpu.matmul %33, %34, %cst_20 {dimension_numbers = #tpu.dot_dimension_numbers<[1], [0], [0], [1], [0, 0, 1, 1], [], []>} : vector<32x32xbf16>, vector<32x128xbf16>, vector<32x128xf32> -> vector<32x128xf32>
    %c3_21 = arith.constant 3 : index
    %c0_22 = arith.constant 0 : index
    %c0_23 = arith.constant 0 : index
    %36 = vector.load %arg2[%c3_21, %c0_22, %c0_23] : memref<5x32x1xf32, #tpu.memory_space<vmem>>, vector<1x32x1xf32>
    %37 = vector.shape_cast %36 : vector<1x32x1xf32> to vector<32x1xf32>
    %38 = vector.broadcast %37 : vector<32x1xf32> to vector<32x128xf32>
    %39 = arith.addf %35, %38 : vector<32x128xf32>
    %40 = math.tanh %39 : vector<32x128xf32>
    %c4 = arith.constant 4 : index
    %c0_24 = arith.constant 0 : index
    %c0_25 = arith.constant 0 : index
    %41 = vector.load %arg1[%c4, %c0_24, %c0_25] : memref<5x32x32xf32, #tpu.memory_space<vmem>>, vector<1x32x1xf32>
    %42 = vector.shape_cast %41 : vector<1x32x1xf32> to vector<32x1xf32>
    %c4_26 = arith.constant 4 : index
    %c0_27 = arith.constant 0 : index
    %c0_28 = arith.constant 0 : index
    %43 = vector.load %arg2[%c4_26, %c0_27, %c0_28] : memref<5x32x1xf32, #tpu.memory_space<vmem>>, vector<1x1x1xf32>
    %44 = vector.shape_cast %43 : vector<1x1x1xf32> to vector<1x1xf32>
    %45 = vector.broadcast %42 : vector<32x1xf32> to vector<32x128xf32>
    %46 = arith.mulf %45, %40 : vector<32x128xf32>
    %cst_29 = arith.constant dense<0.000000e+00> : vector<128xf32>
    %47 = vector.multi_reduction <add>, %46, %cst_29 [0] : vector<32x128xf32> to vector<128xf32>
    %48 = vector.shape_cast %47 : vector<128xf32> to vector<1x128xf32>
    %49 = vector.broadcast %44 : vector<1x1xf32> to vector<1x128xf32>
    %50 = arith.addf %48, %49 : vector<1x128xf32>
    %c0_30 = arith.constant 0 : index
    %c0_31 = arith.constant 0 : index
    %51 = vector.load %arg4[%c0_30, %c0_31] : memref<1x128xf32, #tpu.memory_space<vmem>>, vector<1x128xf32>
    tpu.vector_store %arg4[%c0_30, %c0_31], %50 {strides = array<i32>} : memref<1x128xf32, #tpu.memory_space<vmem>>, vector<1x128xf32>,
    return
  }
  func.func @transform_0(%arg0: i32) -> (i32, i32, i32) {
    %c0_i32 = arith.constant 0 : i32
    %c0_i32_0 = arith.constant 0 : i32
    %c0_i32_1 = arith.constant 0 : i32
    %c0_i32_2 = arith.constant 0 : i32
    return %c0_i32, %c0_i32_0, %c0_i32_1 : i32, i32, i32
  }
  func.func @transform_1(%arg0: i32) -> (i32, i32, i32) {
    %c0_i32 = arith.constant 0 : i32
    %c0_i32_0 = arith.constant 0 : i32
    %c0_i32_1 = arith.constant 0 : i32
    %c0_i32_2 = arith.constant 0 : i32
    return %c0_i32, %c0_i32_0, %c0_i32_1 : i32, i32, i32
  }
  func.func @transform_2(%arg0: i32) -> (i32, i32) {
    %c0_i32 = arith.constant 0 : i32
    %c0_i32_0 = arith.constant 0 : i32
    return %c0_i32, %arg0 : i32, i32
  }
  func.func @transform_3(%arg0: i32) -> (i32, i32) {
    %c0_i32 = arith.constant 0 : i32
    %c0_i32_0 = arith.constant 0 : i32
    return %c0_i32, %arg0 : i32, i32
  }
}

</mosaic_0001>

<bundles_post_ra>
// kernel: tpu_custom_call.1
= control target key start
LH: loop header
LB: loop body
LE: loop exit
PB: predicated region body
PF: predicated region fallthrough
CT: control target
= control target key end

     0   :  { %v556_v2 = vmov 0   ;;  %s710_s0 = inlined_call_operand.vmem [shape: f32[5,32,32], index: 0, kind: input, shape index: {}]   ;;  %s711_s1 = inlined_call_operand.vmem [shape: f32[5,32,1], index: 1, kind: input, shape index: {}]   ;;  %s712_s2 = inlined_call_operand.vmem [shape: f32[1,128], index: 2, kind: input, shape index: {}]   ;;  %s713_s3 = inlined_call_operand.hbm [shape: f32[1,128], index: 3, kind: output, shape index: {}]  }
   0x1   :  { %v51_v0 = vld [vmem:[%s711_s1] sm:$0xff]  ;;  %499 = vset.pattern.permute.xlu1 %v556_v2  ;;  %498 = vset.pattern.permute.xlu0 %v556_v2  ;;  %v52_v3 = vld [vmem:[%s711_s1 + $0x8] sm:$0xff]  ;;  %v20_v5 = vld [vmem:[%s710_s0 + $0x18] sm:$0xff] }
   0x2   :  { %v17_v1 = vld [vmem:[%s710_s0] sm:$0xff]  ;;  %57 = vperm.xlu1 %499, %v51_v0   ;;  %v18_v4 = vld [vmem:[%s710_s0 + $0x8] sm:$0xff]  ;;  %v19_v6 = vld [vmem:[%s710_s0 + $0x10] sm:$0xff] }
   0x3   :  { %23 = vperm.xlu0 %498, %v17_v1  }
   0x6   :  { %62 = vperm.xlu1 %499, %v52_v3  }
   0x7   :  { %28 = vperm.xlu0 %498, %v18_v4  }
   0x8   :  { %8 = vsyncpa [#allocation3], 0  ;;  %v54_v7 = vld [vmem:[%s711_s1 + $0x18] sm:$0xff]  ;;  %v53_v8 = vld [vmem:[%s711_s1 + $0x10] sm:$0xff]  ;;  %vm117_vm0 = vcmask 261120  }
   0x9   :  { %v430_v9 = vld [vmem:[%s711_s1 + $0x28] sm:$0xff]  ;;  %v429_v10 = vld [vmem:[%s711_s1 + $0x20] sm:$0xff]  ;;  %v432_v11 = vld [vmem:[%s711_s1 + $0x38] sm:$0xff] }
   0xa   :  { %38 = vperm.xlu1 %499, %v20_v5   ;;  %v431_v12 = vld [vmem:[%s711_s1 + $0x30] sm:$0xff]  ;;  %v440_v13 = vld [vmem:[%s711_s1 + $0x48] sm:$0xff]  ;;  %v439_v14 = vld [vmem:[%s711_s1 + $0x40] sm:$0xff] }
   0xb   :  { %33 = vperm.xlu0 %498, %v19_v6   ;;  %v442_v15 = vld [vmem:[%s711_s1 + $0x58] sm:$0xff]  ;;  %v441_v16 = vld [vmem:[%s711_s1 + $0x50] sm:$0xff]  ;;  %v425_v17 = vld [vmem:[%s710_s0 + $0x20] sm:$0xff] }
   0xc   :  { %v426_v18 = vld [vmem:[%s710_s0 + $0x28] sm:$0xff]  ;;  %v449_v20 = vld [vmem:[%s711_s1 + $0x60] sm:$0xff]  ;;  %v452_v22 = vld [vmem:[%s711_s1 + $0x78] sm:$0xff] }
   0xd   :  { %v450_v19 = vld [vmem:[%s711_s1 + $0x68] sm:$0xff]  ;;  %v88_v21 = vpack.c.bf16 %v426_v18, %v425_v17  ;;  %v451_v23 = vld [vmem:[%s711_s1 + $0x70] sm:$0xff]  ;;  %v455_v25 = vld [vmem:[%s710_s0 + $0x80] sm:$0xff] }
   0xe   :  { %72 = vperm.xlu1 %499, %v54_v7   ;;  %v456_v24 = vld [vmem:[%s710_s0 + $0x88] sm:$0xff]  ;;  %v458_v26 = vld [vmem:[%s710_s0 + $0x98] sm:$0xff]  ;;  %v457_v27 = vld [vmem:[%s710_s0 + $0x90] sm:$0xff] }
   0xf   :  { %67 = vperm.xlu0 %498, %v53_v8   ;;  %476 = vmatprep.mubr.msk.bf16.mxu0 %vm117_vm0, %v88_v21  ;;  %v459_v28 = vld [vmem:[%s711_s1 + $0x80] sm:$0x1]  ;;  %v427_v51 = vld [vmem:[%s710_s0 + $0x30] sm:$0xff]  ;;  %v428_v52 = vld [vmem:[%s710_s0 + $0x38] sm:$0xff] }
  0x10   :  { %v424_v29 = vld [vmem:[%s712_s2] ss:$0 sm:$0xff]  ;;  %v89_v54 = vpack.c.bf16 %v428_v52, %v427_v51  ;;  %v436_v56 = vld [vmem:[%s710_s0 + $0x48] sm:$0xff] }
  0x11   :  { %v435_v55 = vld [vmem:[%s710_s0 + $0x40] sm:$0xff] }
  0x12   :  { %104 = vperm.xlu1 %499, %v430_v9   ;;  %v182_v57 = vpack.c.bf16 %v436_v56, %v435_v55 }
  0x13   :  { %99 = vperm.xlu0 %498, %v429_v10  }
  0x14   :  { %484 = vmatprep.mubr.msk.bf16.mxu1 %vm117_vm0, %v182_v57 }
  0x16   :  { %114 = vperm.xlu1 %499, %v432_v11  }
  0x17   :  { %109 = vperm.xlu0 %498, %v431_v12   ;;  %v437_v12 = vld [vmem:[%s710_s0 + $0x50] sm:$0xff] }
  0x1a   :  { %198 = vperm.xlu1 %499, %v440_v13   ;;  %v438_v13 = vld [vmem:[%s710_s0 + $0x58] sm:$0xff] }
  0x1b   :  { %193 = vperm.xlu0 %498, %v439_v14   ;;  %v183_v14 = vpack.c.bf16 %v438_v13, %v437_v12 }
  0x1e   :  { %208 = vperm.xlu1 %499, %v442_v15   ;;  %v445_v15 = vld [vmem:[%s710_s0 + $0x60] sm:$0xff] }
  0x1f   :  { %203 = vperm.xlu0 %498, %v441_v16   ;;  %v446_v16 = vld [vmem:[%s710_s0 + $0x68] sm:$0xff] }
  0x20   :  { %v275_v17 = vpack.c.bf16 %v446_v16, %v445_v15 }
  0x22   :  { %291 = vperm.xlu1 %499, %v450_v19  }
  0x23   :  { %286 = vperm.xlu0 %498, %v449_v20  }
  0x26   :  { %301 = vperm.xlu1 %499, %v452_v22  }
  0x27   :  { %296 = vperm.xlu0 %498, %v451_v23  }
  0x2a   :  { %377 = vperm.xlu1 %499, %v456_v24  }
  0x2b   :  { %372 = vperm.xlu0 %498, %v455_v25  }
  0x2e   :  { %387 = vperm.xlu1 %499, %v458_v26  }
  0x2f   :  { %382 = vperm.xlu0 %498, %v457_v27  }
  0x33   :  { %405 = vperm.xlu0 %498, %v459_v28  }
  0x81   :  { %v58_v30 = vpop.permute.xlu1 %57 }
  0x82   :  { %v24_v31 = vpop.permute.xlu0 %23 }
  0x83   :  { %v47_v32 = vmul.f32 %v424_v29, %v24_v31 }
  0x85   :  { %v75_v33 = vadd.f32 %v58_v30, %v47_v32  ;;  %v63_v34 = vpop.permute.xlu1 %62 }
  0x86   :  { %v29_v35 = vpop.permute.xlu0 %28 }
  0x87   :  { %v48_v36 = vmul.f32 %v424_v29, %v29_v35  ;;  %500 = vtanh.f32 %v75_v33 }
  0x89   :  { %v76_v37 = vadd.f32 %v63_v34, %v48_v36  ;;  %v39_v38 = vpop.permute.xlu1 %38  ;;  %v447_v36 = vld [vmem:[%s710_s0 + $0x70] sm:$0xff] }
  0x8a   :  { %v34_v39 = vpop.permute.xlu0 %33  ;;  %v50_v40 = vmul.f32 %v424_v29, %v39_v38 }
  0x8b   :  { %502 = vtanh.f32 %v76_v37  ;;  %v49_v41 = vmul.f32 %v424_v29, %v34_v39  ;;  %v448_v37 = vld [vmem:[%s710_s0 + $0x78] sm:$0xff]  ;;  %s557_s0 = smov [#allocation2]  }
  0x8c   :  { %v276_v38 = vpack.c.bf16 %v448_v37, %v447_v36  ;;  %s416_s5 = sshll.u32 %s557_s0, 4  ;;  %s417_s5 = int_to_ptr.vmem [resolvable:$true] %s416_s5 }
  0x8d   :  { %v73_v42 = vpop.permute.xlu1 %72  ;;  %s532_s6 = scalar_lea.vmem %s417_s5, 16  ;;  %s536_s7 = scalar_lea.vmem %s417_s5, 32 }
  0x8e   :  { %v68_v43 = vpop.permute.xlu0 %67  ;;  %v78_v44 = vadd.f32 %v73_v42, %v50_v40  ;;  %p533_p0 = scmp.ne.s32.totalorder %s417_s5, %s532_s6  ;;  %p537_p1 = scmp.lt.s32.totalorder %s417_s5, %s417_s5 }
  0x8f   :  { %v77_v45 = vadd.f32 %v68_v43, %v49_v41  ;;  %p538_p2 = scmp.lt.s32.totalorder %s536_s7, %s532_s6 }
  0x90   :  { %504 = vtanh.f32 %v78_v44 }
  0x91   :  { %506 = vtanh.f32 %v77_v45  ;;  %v501_v46 = vpop.eup %500  ;;  %v105_v59 = vpop.permute.xlu1 %104  ;;  %p539_p3 = por %p538_p2, %p537_p1 }
  0x92   :  { %v100_v58 = vpop.permute.xlu0 %99 }
  0x93   :  { %p540_p4 = pnand %p539_p3, %p533_p0 }
  0x95   :  { %v503_v47 = vpop.eup %502  ;;  %v115_v0 = vpop.permute.xlu1 %114 }
  0x96   :  { %v90_v48 = vpack.c.bf16 %v503_v47, %v501_v46  ;;  %v110_v60 = vpop.permute.xlu0 %109 }
  0x98   :  { %472 = vmatprep.subr.bf16.mxu0 %v90_v48 }
  0x99   :  { %473 = vmatpush3.bf16.msra.mxu0 %v90_v48  ;;  %v199_v19 = vpop.permute.xlu1 %198 }
  0x9a   :  { %v505_v49 = vpop.eup %504  ;;  %v194_v18 = vpop.permute.xlu0 %193 }
  0x9b   :  { %v507_v50 = vpop.eup %506 }
  0x9c   :  { %v91_v53 = vpack.c.bf16 %v505_v49, %v507_v50 }
  0x9d   :  { %v209_v24 = vpop.permute.xlu1 %208 }
  0x9e   :  { %474 = vmatprep.subr.bf16.mxu0 %v91_v53  ;;  %v204_v20 = vpop.permute.xlu0 %203 }
  0x9f   :  { %475 = vmatpush3.bf16.msra.mxu0 %v91_v53 }
  0xa1   :  { %v292_v40 = vpop.permute.xlu1 %291 }
  0xa2   :  { %477 = vmatmul.mubr.msk.bf16.vlgmr.msra.gmra.mrb[0].mxu0 %vm117_vm0, %v89_v54  ;;  %v287_v39 = vpop.permute.xlu0 %286 }
  0xa3   :  { %492 = vmatprep.mubr.msk.bf16.mxu0 %vm117_vm0, %v275_v17 }
  0xa5   :  { %v302_v47 = vpop.permute.xlu1 %301 }
  0xa6   :  { %v297_v41 = vpop.permute.xlu0 %296 }
  0xa9   :  { %v378_v53 = vpop.permute.xlu1 %377 }
  0xaa   :  { %v373_v51 = vpop.permute.xlu0 %372 }
 0x175   :  { %v478_v61 = vpop.f32.mrb[0].mxu0 }
 0x176   :  { %v167_v62 = vadd.f32 %v478_v61, %v110_v60  ;;  %v158_v63 = vpop.f32.mrb[1].mxu0 }
 0x177   :  { %v159_v1 = vadd.f32 %v158_v63, %v100_v58  ;;  %v479_v2 = vpop.f32.mrb[2].mxu0 }
 0x178   :  { %508 = vtanh.f32 %v167_v62  ;;  %v170_v3 = vadd.f32 %v479_v2, %v115_v0  ;;  %v161_v4 = vpop.f32.mrb[3].mxu0  ;;  %v388_v62 = vpop.permute.xlu1 %387 }
 0x179   :  { %510 = vtanh.f32 %v159_v1  ;;  %v162_v5 = vadd.f32 %v161_v4, %v105_v59  ;;  %v383_v59 = vpop.permute.xlu0 %382 }
 0x17a   :  { %512 = vtanh.f32 %v170_v3 }
 0x17b   :  { %514 = vtanh.f32 %v162_v5 }
 0x182   :  { %v509_v6 = vpop.eup %508 }
 0x183   :  { %v511_v7 = vpop.eup %510 }
 0x184   :  { %v513_v8 = vpop.eup %512 }
 0x185   :  { %v515_v9 = vpop.eup %514  ;;  %v185_v10 = vpack.c.bf16 %v513_v8, %v509_v6  ;;  %v406_v8 = vpop.permute.xlu0 %405 }
 0x186   :  { %v184_v11 = vpack.c.bf16 %v515_v9, %v511_v7 }
 0x188   :  { %480 = vmatprep.subr.bf16.mxu1 %v184_v11 }
 0x189   :  { %481 = vmatpush3.bf16.msra.mxu1 %v184_v11 }
 0x18a   :  { %482 = vmatprep.subr.bf16.mxu1 %v185_v10 }
 0x18d   :  { %483 = vmatpush3.bf16.msra.mxu1 %v185_v10 }
 0x190   :  { %485 = vmatmul.mubr.msk.bf16.vlgmr.msra.gmra.mrb[0].mxu1 %vm117_vm0, %v183_v14 }
 0x263   :  { %v486_v21 = vpop.f32.mrb[0].mxu1 }
 0x264   :  { %v260_v22 = vadd.f32 %v486_v21, %v204_v20  ;;  %v251_v23 = vpop.f32.mrb[1].mxu1 }
 0x265   :  { %v252_v25 = vadd.f32 %v251_v23, %v194_v18  ;;  %v487_v26 = vpop.f32.mrb[2].mxu1 }
 0x266   :  { %516 = vtanh.f32 %v260_v22  ;;  %v263_v27 = vadd.f32 %v487_v26, %v209_v24  ;;  %v254_v28 = vpop.f32.mrb[3].mxu1 }
 0x267   :  { %518 = vtanh.f32 %v252_v25  ;;  %v255_v29 = vadd.f32 %v254_v28, %v199_v19 }
 0x268   :  { %520 = vtanh.f32 %v263_v27 }
 0x269   :  { %522 = vtanh.f32 %v255_v29 }
 0x270   :  { %v517_v30 = vpop.eup %516 }
 0x271   :  { %v519_v31 = vpop.eup %518 }
 0x272   :  { %v521_v32 = vpop.eup %520 }
 0x273   :  { %v523_v33 = vpop.eup %522  ;;  %v278_v34 = vpack.c.bf16 %v521_v32, %v517_v30 }
 0x274   :  { %v277_v35 = vpack.c.bf16 %v523_v33, %v519_v31 }
 0x276   :  { %488 = vmatprep.subr.bf16.mxu0 %v277_v35 }
 0x277   :  { %489 = vmatpush3.bf16.msra.mxu0 %v277_v35 }
 0x278   :  { %490 = vmatprep.subr.bf16.mxu0 %v278_v34 }
 0x27b   :  { %491 = vmatpush3.bf16.msra.mxu0 %v278_v34 }
 0x27e   :  { %493 = vmatmul.mubr.msk.bf16.vlgmr.msra.gmra.mrb[4].mxu0 %vm117_vm0, %v276_v38 }
 0x351   :  { %v494_v42 = vpop.f32.mrb[4].mxu0 }
 0x352   :  { %v353_v43 = vadd.f32 %v494_v42, %v297_v41  ;;  %v344_v44 = vpop.f32.mrb[5].mxu0 }
 0x353   :  { %v345_v45 = vadd.f32 %v344_v44, %v287_v39  ;;  %v495_v46 = vpop.f32.mrb[6].mxu0 }
 0x354   :  { %v347_v48 = vpop.f32.mrb[7].mxu0  ;;  %v356_v49 = vadd.f32 %v495_v46, %v302_v47 }
 0x355   :  { %524 = vtanh.f32 %v345_v45  ;;  %v348_v50 = vadd.f32 %v347_v48, %v292_v40 }
 0x356   :  { %526 = vtanh.f32 %v353_v43 }
 0x357   :  { %528 = vtanh.f32 %v348_v50 }
 0x358   :  { %530 = vtanh.f32 %v356_v49 }
 0x35f   :  { %v525_v52 = vpop.eup %524 }
 0x360   :  { %v527_v54 = vpop.eup %526  ;;  %v390_v56 = vmul.f32 %v525_v52, %v373_v51 }
 0x361   :  { %v529_v55 = vpop.eup %528  ;;  %v392_v60 = vmul.f32 %v527_v54, %v383_v59 }
 0x362   :  { %v391_v57 = vmul.f32 %v529_v55, %v378_v53  ;;  %v531_v58 = vpop.eup %530 }
 0x363   :  { %v393_v63 = vmul.f32 %v531_v58, %v388_v62 }
 0x364   :  { %v394_v61 = vadd.f32 %v391_v57, %v390_v56 }
 0x366   :  { %v395_v0 = vadd.f32 %v394_v61, %v392_v60 }
 0x368   :  { %v396_v1 = vadd.f32 %v395_v0, %v393_v63 }
 0x36a   :  { %v397_v2 = vrot.slane %v396_v1, 4 }
 0x36c   :  { %v398_v3 = vadd.f32 %v397_v2, %v396_v1 }
 0x36e   :  { %v399_v4 = vrot.slane %v398_v3, 2 }
 0x370   :  { %v400_v5 = vadd.f32 %v399_v4, %v398_v3 }
 0x372   :  { %v401_v6 = vrot.slane %v400_v5, 1 }
 0x374   :  { %v402_v7 = vadd.f32 %v401_v6, %v400_v5 }
 0x376   :  { %v408_v9 = vadd.f32 %v406_v8, %v402_v7 }
 0x378   :  { %409 = vst [vmem:[#allocation2] sm:$0x1] %v408_v9 }
 0x379   :  { %543 = shalt.err (!%p540_p4)
}
 0x37a   :  { %s544_s10 = scalar_lea.hbm %s713_s3, 16 }
 0x37b   :  { %p545_p5 = scmp.ne.s32.totalorder %s713_s3, %s544_s10  ;;  %p548_p6 = scmp.lt.u32.totalorder %s544_s10, %s713_s3 }
 0x37d   :  { %p550_p7 = pnand %p548_p6, %p545_p5 }
 0x37f   :  { %553 = shalt.err (!%p550_p7)
}
 0x380   :  { %419 = dma.vmem_to_hbm [thread:$0]  %s417_s5, 16, %s713_s3, [#allocation3]  }
 0x381   :  { %554 = dma.done.wait [#allocation3], 16  }
 0x382   :  { %555 = vsyncadd [#allocation3], 4294967280 }
 0x383   :  { %423 = vsyncpa [#allocation3], 1 }

</bundles_post_ra>
